<compile_context>
chip_gen: v7x
topology: tpu7x:2x2x1
jax: 0.10.0
libtpu: 0.0.40
codegen_flags: <defaults>
</compile_context>

<pallas_src>
import functools

import jax
import jax.numpy as jnp
import numpy as np
from jax import lax
from jax.experimental import pallas as pl
from jax.experimental.pallas import tpu as pltpu


# ----------------------------------------------------------------------------
# Pallas kernel: out = dropout(x + pe)
#   seed_ref : (1,)        int32 scalar-prefetch seed (ignored when no dropout)
#   x_ref    : (bs, ts, D) input slab for (batch tile bi, seq tile ti)
#   p_ref    : (T,  D)     FULL positional table slice — VMEM-resident (constant
#                          block index), DMA'd from HBM once for the whole grid
#   o_ref    : (bs, ts, D) output slab
# ----------------------------------------------------------------------------
def _pos_enc_kernel(seed_ref, x_ref, p_ref, o_ref, *,
                    dropout_rate, apply_dropout, seq_block, total_seq):
    bi = pl.program_id(0)          # batch-tile index
    ti = pl.program_id(1)          # seq-tile index

    # Slice this tile's rows out of the resident table and add (in X.dtype).
    p = p_ref[pl.ds(ti * seq_block, seq_block), :]            # (ts, D)
    y = x_ref[...] + p[None, :, :]                            # (bs, ts, D)

    if apply_dropout:
        if dropout_rate >= 1.0:                               # degenerate p = 1
            o_ref[...] = jnp.zeros(o_ref.shape, o_ref.dtype)
            return
        bs, ts, D = y.shape
        # Counter-based PRNG: murmur3 fmix32 of the *global* element index,
        # keyed by the seed.  Unique, well-separated stream per element and per
        # block regardless of tiling; pure jnp ops (works compiled + interpret).
        b_ix = lax.broadcasted_iota(jnp.int32, (bs, ts, D), 0) + bi * bs
        t_ix = lax.broadcasted_iota(jnp.int32, (bs, ts, D), 1) + ti * ts
        d_ix = lax.broadcasted_iota(jnp.int32, (bs, ts, D), 2)
        ctr = ((b_ix * total_seq + t_ix) * D + d_ix).astype(jnp.uint32)
        z = ctr + seed_ref[0].astype(jnp.uint32) * jnp.uint32(0x9E3779B9)
        z = (z ^ (z >> 16)) * jnp.uint32(0x85EBCA6B)
        z = (z ^ (z >> 13)) * jnp.uint32(0xC2B2AE35)
        z = z ^ (z >> 16)
        # Top 24 bits -> uniform in [0, 1); keep with probability 1 - p.
        u = (z >> 8).astype(jnp.float32) * jnp.float32(1.0 / (1 << 24))
        keep = u >= jnp.float32(dropout_rate)
        y = jnp.where(keep, y * (1.0 / (1.0 - dropout_rate)), 0.0)

    o_ref[...] = y.astype(o_ref.dtype)


# ----------------------------------------------------------------------------
# Block sizing: dtype-aware, (8,128)-legal, ~2 MiB per block (safe on v5e's
# 16 MiB scoped-VMEM default while in the large-tile >=85%-roofline regime).
# ----------------------------------------------------------------------------
def _choose_blocks(B, T, D, itemsize, budget_bytes=2 << 20):
    row_bytes = T * D * itemsize
    if row_bytes <= budget_bytes:
        ts = T                                          # full sequence per block
        bs = max(1, min(B, budget_bytes // max(row_bytes, 1)))
        while B % bs:                                   # bs must divide B
            bs -= 1
    else:
        bs = 1
        if T % 8 != 0:
            ts = T                                      # full extent is always legal
        else:
            ts = max(8, min(T, (budget_bytes // (D * itemsize)) // 8 * 8))
            while T % ts:                               # multiple of 8 dividing T
                ts -= 8
    # Megacore (v7x has 2 TCs): keep >=2 blocks along a parallel axis when the
    # whole tensor would otherwise collapse into a single grid step.
    if bs == B and ts == T and B > 1:
        bs = max(d for d in range(1, B) if B % d == 0)
    return bs, ts


# ----------------------------------------------------------------------------
# Wrapper: build P (== PyTorch __init__) and run the kernel (== forward)
# ----------------------------------------------------------------------------
def make_position_encoding_table(num_hiddens, max_len=1000):
    """Sinusoidal table, identical math to the PyTorch module (num_hiddens even)."""
    pos = jnp.arange(max_len, dtype=jnp.float32)[:, None]                  # (L, 1)
    div = jnp.power(10000.0,
                    jnp.arange(0, num_hiddens, 2, dtype=jnp.float32) / num_hiddens)
    angles = pos / div                                                      # (L, D/2)
    P = jnp.zeros((max_len, num_hiddens), jnp.float32)
    P = P.at[:, 0::2].set(jnp.sin(angles))
    P = P.at[:, 1::2].set(jnp.cos(angles))
    return P


@functools.partial(jax.jit, static_argnames=("dropout_rate", "train"))
def position_encoding_forward(P, X, seed, dropout_rate=0.0, train=True):
    """X: (batch, seq, num_hiddens) -> same shape. P: (max_len, num_hiddens)."""
    B, T, D = X.shape
    p_slice = P[:T].astype(X.dtype)                    # static slice, compact dtype
    itemsize = jnp.dtype(X.dtype).itemsize
    bs, ts = _choose_blocks(B, T, D, itemsize)
    apply_dropout = bool(train) and float(dropout_rate) > 0.0

    kernel = functools.partial(_pos_enc_kernel,
                               dropout_rate=float(dropout_rate),
                               apply_dropout=apply_dropout,
                               seq_block=ts, total_seq=T)
    seed_arr = jnp.asarray(seed, dtype=jnp.int32).reshape((1,))

    return pl.pallas_call(
        kernel,
        out_shape=jax.ShapeDtypeStruct((B, T, D), X.dtype),
        grid_spec=pltpu.PrefetchScalarGridSpec(
            num_scalar_prefetch=1,                     # seed -> SMEM
            grid=(B // bs, T // ts),
            in_specs=[
                pl.BlockSpec((bs, ts, D), lambda b, t, seed_ref: (b, t, 0)),  # X
                pl.BlockSpec((T, D),      lambda b, t, seed_ref: (0, 0)),     # P (resident)
            ],
            out_specs=pl.BlockSpec((bs, ts, D), lambda b, t, seed_ref: (b, t, 0)),
        ),
        compiler_params=pltpu.CompilerParams(
            dimension_semantics=("parallel", "parallel"),   # fully elementwise
        ),
    )(seed_arr, X, p_slice)


# ----------------------------------------------------------------------------
# Demo / correctness check
# ----------------------------------------------------------------------------
if __name__ == "__main__":
    num_hiddens, max_len = 128, 1000      # D=128 keeps output stores lane-dense
    batch, seq_len = 2, 16
    dropout_rate = 0.5

    key = jax.random.PRNGKey(0)
    X = jax.random.normal(key, (batch, seq_len, num_hiddens), jnp.float32)
    P = make_position_encoding_table(num_hiddens, max_len)

    # --- eval path (dropout inactive): must equal X + P[:T] exactly ------------
    out_eval = position_encoding_forward(P, X, 0, dropout_rate=0.0, train=False)
    out_eval = jax.block_until_ready(out_eval)
    ref = X + P[None, :seq_len, :]
    assert out_eval.shape == X.shape
    np.testing.assert_allclose(np.asarray(out_eval), np.asarray(ref),
                               rtol=1e-6, atol=1e-6)

    # --- training path: every element is either 0 (dropped) or (x+pe)/(1-p) ----
    out_drop = position_encoding_forward(P, X, 1234, dropout_rate=dropout_rate,
                                         train=True)
    out_drop = np.asarray(jax.block_until_ready(out_drop))
    scaled = np.asarray(ref) / (1.0 - dropout_rate)
    is_zero = np.isclose(out_drop, 0.0, atol=1e-6)
    is_kept = np.isclose(out_drop, scaled, rtol=1e-6, atol=1e-6)
    assert np.all(is_zero | is_kept), "dropout output has unexpected values"
    keep_frac = float(is_kept.mean())
    assert 0.3 < keep_frac < 0.7, f"keep fraction {keep_frac} far from 1-p=0.5"

    print("KERNEL_OK")
</pallas_src>

<mosaic_0001>
module attributes {stable_mosaic.version = 11 : i64} {
  func.func @_pos_enc_kernel(%arg0: i32, %arg1: i32, %arg2: memref<1xi32, #tpu.memory_space<smem>>, %arg3: memref<1x16x128xf32, #tpu.memory_space<vmem>>, %arg4: memref<16x128xf32, #tpu.memory_space<vmem>>, %arg5: memref<1x16x128xf32, #tpu.memory_space<vmem>>) attributes {dimension_semantics = [#tpu.dimension_semantics<parallel>, #tpu.dimension_semantics<parallel>], iteration_bounds = array<i64: 2, 1>, scalar_prefetch = 1 : i64, scratch_operands = 0 : i64, tpu.core_type = #tpu.core_type<tc>, window_params = [{transform_indices = @transform_0, window_bounds = array<i64: 1, 16, 128>}, {pipeline_mode = #tpu.pipeline_mode<synchronous>, transform_indices = @transform_1, window_bounds = array<i64: 16, 128>}, {transform_indices = @transform_2, window_bounds = array<i64: 1, 16, 128>}]} {
    %c16_i32 = arith.constant 16 : i32
    %0 = arith.muli %arg1, %c16_i32 : i32
    %1 = arith.index_cast %0 : i32 to index
    %c0 = arith.constant 0 : index
    %2 = vector.load %arg4[%1, %c0] : memref<16x128xf32, #tpu.memory_space<vmem>>, vector<16x128xf32>
    %c0_0 = arith.constant 0 : index
    %c0_1 = arith.constant 0 : index
    %c0_2 = arith.constant 0 : index
    %3 = vector.load %arg3[%c0_0, %c0_1, %c0_2] : memref<1x16x128xf32, #tpu.memory_space<vmem>>, vector<1x16x128xf32>
    %4 = vector.shape_cast %2 : vector<16x128xf32> to vector<1x16x128xf32>
    %5 = arith.addf %3, %4 : vector<1x16x128xf32>
    %c0_3 = arith.constant 0 : index
    %c0_4 = arith.constant 0 : index
    %c0_5 = arith.constant 0 : index
    %6 = vector.load %arg5[%c0_3, %c0_4, %c0_5] : memref<1x16x128xf32, #tpu.memory_space<vmem>>, vector<1x16x128xf32>
    tpu.vector_store %arg5[%c0_3, %c0_4, %c0_5], %5 {strides = array<i32>} : memref<1x16x128xf32, #tpu.memory_space<vmem>>, vector<1x16x128xf32>,
    return
  }
  func.func @transform_0(%arg0: i32, %arg1: i32, %arg2: memref<1xi32, #tpu.memory_space<smem>>) -> (i32, i32, i32) {
    %c0_i32 = arith.constant 0 : i32
    %c0_i32_0 = arith.constant 0 : i32
    return %arg0, %arg1, %c0_i32 : i32, i32, i32
  }
  func.func @transform_1(%arg0: i32, %arg1: i32, %arg2: memref<1xi32, #tpu.memory_space<smem>>) -> (i32, i32) {
    %c0_i32 = arith.constant 0 : i32
    %c0_i32_0 = arith.constant 0 : i32
    %c0_i32_1 = arith.constant 0 : i32
    return %c0_i32, %c0_i32_0 : i32, i32
  }
  func.func @transform_2(%arg0: i32, %arg1: i32, %arg2: memref<1xi32, #tpu.memory_space<smem>>) -> (i32, i32, i32) {
    %c0_i32 = arith.constant 0 : i32
    %c0_i32_0 = arith.constant 0 : i32
    return %arg0, %arg1, %c0_i32 : i32, i32, i32
  }
}

</mosaic_0001>

<bundles_post_ra>
// kernel: position_encoding_forward.1
= control target key start
LH: loop header
LB: loop body
LE: loop exit
PB: predicated region body
PF: predicated region fallthrough
CT: control target
= control target key end

     0   :  { %9 = vsyncpa [#allocation5], 0  ;;  %s703_s0 = inlined_call_operand.<no memory space> [shape: s32[1], index: 0, kind: input, shape index: {}]   ;;  %s704_s1 = inlined_call_operand.hbm [shape: f32[2,16,128], index: 1, kind: input, shape index: {}]   ;;  %s705_s2 = inlined_call_operand.vmem [shape: f32[16,128], index: 2, kind: input, shape index: {}]   ;;  %s706_s3 = inlined_call_operand.hbm [shape: f32[2,16,128], index: 3, kind: output, shape index: {}]  }
   0x1   :  { %11 = vsyncpa [#allocation5 + $0x1], 0 }
   0x2   :  { %12 = vsyncpa [#allocation6], 0 }
   0x3   :  { %14 = vsyncpa [#allocation6 + $0x1], 0  ;;  %s522_s12 = smov 0   ;;  %s524_s13 = smov 0  }
   0x4   :  { %s526_s14 = smov 0   ;;  %s528_s0 = smov 0  }
   0x5   :  { %s530_s15 = smov 0   ;;  %s532_s16 = smov 0  }
   0x6 LB: > { %s299_s17 = sadd.s32 4294967295, %s494_s16   ;;  %s300_s18 = sadd.s32 4294967294, %s494_s16   ;;  %s494_s16 = sphi %s532_s16, %s20_s16   ;;  %s490_s15 = sphi %s530_s15, %s721_s15   ;;  %s486_s0 = sphi %s528_s0, %s720_s0   ;;  %s482_s14 = sphi %s526_s14, %s719_s14   ;;  %s478_s13 = sphi %s524_s13, %s718_s13   ;;  %s474_s12 = sphi %s522_s12, %s717_s12  }
   0x7   : > { %s32_s19 = sadd.s32 1, %s490_s15  ;;  %s41_s20 = sadd.s32 1, %s482_s14 }
   0x8   : > { %p34_p0 = scmp.ge.s32.totalorder %s32_s19, 2  ;;  %p48_p1 = scmp.ne.s32.totalorder %s482_s14, %s478_s13 }
   0x9   : > { %p49_p2 = scmp.eq.s32.totalorder %s494_s16, 0  ;;  %p54_p3 = scmp.ne.s32.totalorder %s478_s13, %s474_s12 }
   0xa   : > { %s723_s19 = smov (%p34_p0, %s32_s19), 0  ;;  %p55_p5 = scmp.eq.s32.totalorder %s299_s17, 0 }
   0xb   : > { %p563_p4 = por %p49_p2, %p48_p1  ;;  %s36_s22 = ssub.s32 %s490_s15, %s723_s19 }
   0xc   : > { %p101_p6 = scmp.eq.s32.totalorder %s299_s17, 1  ;;  %p39_p7 = scmp.eq.s32.totalorder %s36_s22, 0 }
   0xd   : > { %p569_p8 = por %p55_p5, %p54_p3  ;;  %p107_p10 = scmp.eq.s32.totalorder %s300_s18, 1 }
   0xe   : > { %p573_p9 = por %p101_p6, %p48_p1  ;;  %p328_p13 = scmp.lt.s32.totalorder %s494_s16, 2 }
   0xf   : > { %s578_s25 = scalar_select %p39_p7, %s482_s14, %s41_s20  }
  0x10   : > { %s710_s24 = scalar_select %p573_p9, 1, 0 }
  0x11   : > { %p580_p11 = por %p107_p10, %p54_p3  ;;  %s130_s27 = sand.u32 1, %s482_s14  }
  0x12   : > { %s303_s28 = sshll.u32 %s130_s27, 4  ;;  %s314_s29 = sshll.u32 %s490_s15, 8 }
  0x13   : > { %s711_s26 = scalar_select %p580_p11, 1, 0 }
  0x14   : > { %s591_s5 = scalar_lea.hbm %s704_s1, %s314_s29  ;;  %s134_s6 = scalar_lea.vmem [#allocation4], %s303_s28 }
  0x15   : > { %s143_s7 = sshll.u32 %s134_s6, 4  ;;  %p597_p0 = pnand %p328_p13, %p563_p4  ;;  %s593_s7 = int_to_ptr.vmem [resolvable:$true] %s143_s7 }
  0x16   : > { %s602_s9 = scalar_lea.sflag [#allocation5], %s130_s27  ;;  %s382_s10 = scalar_lea.hbm %s591_s5, 256 }
  0x17   : > { %p383_p2 = scmp.ne.s32.totalorder %s591_s5, %s382_s10  ;;  %p384_p3 = pneg %p597_p0 }
  0x18   : > { %s387_s18 = scalar_lea.hbm %s704_s1, 512  ;;  %p388_p4 = scmp.lt.u32.totalorder %s591_s5, %s704_s1 }
  0x19   : > { %p385_p5 = pnand %p384_p3, %p383_p2  ;;  %p389_p7 = scmp.lt.u32.totalorder %s387_s18, %s382_s10 }
  0x1a   : > { %p391_p13 = scmp.lt.u32.totalorder %s382_s10, %s591_s5 }
  0x1b   : > { %p386_p6 = pneg %p385_p5  ;;  %p390_p10 = por %p389_p7, %p388_p4 }
  0x1d   : > { %p392_p12 = por %p391_p13, %p390_p10 }
  0x1f   : > { %p393_p1 = pnand %p392_p12, %p386_p6 }
  0x21   : > { %396 = shalt.err (!%p393_p1)
}
  0x22   : > { %s397_s22 = scalar_lea.vmem %s593_s7, 256  ;;  %s496_s27 = smov [#allocation4]  }
  0x23   : > { %p398_p2 = scmp.ne.s32.totalorder %s593_s7, %s397_s22  ;;  %s402_s28 = sshll.u32 %s496_s27, 4  ;;  %s403_s28 = int_to_ptr.vmem [resolvable:$false] %s402_s28 }
  0x24   : > { %s404_s29 = scalar_lea.vmem %s403_s28, 512  ;;  %p405_p9 = scmp.lt.s32.totalorder %s593_s7, %s403_s28 }
  0x25   : > { %p400_p5 = pnand %p398_p2, %p384_p3  ;;  %p406_p4 = scmp.lt.s32.totalorder %s404_s29, %s397_s22 }
  0x27   : > { %p401_p11 = pneg %p400_p5  ;;  %p407_p7 = por %p406_p4, %p405_p9 }
  0x29   : > { %p408_p10 = pnand %p407_p7, %p401_p11 }
  0x2b   : > { %411 = shalt.err (!%p408_p10)
}
  0x2c   : > { %s497_s30 = smov 128   ;;  %s498_s4 = smov 8  }
  0x2d   : > { %323 = dma.hbm_to_vmem [thread:$0]  (!%p597_p0), %s591_s5, 256, %s593_s7, %s602_s9, %s497_s30, %s497_s30, %s498_s4  }
  0x2e   : > { %p151_p12 = scmp.lt.s32.totalorder %s494_s16, 3  ;;  %p713_p1 = scmp.ge.s32.totalorder %s494_s16, 1 }
  0x30   : > { %p152_p3 = pnand %p713_p1, %p151_p12 }
  0x31   : > { %s634_s6 = sand.u32 (!%p152_p3), 1, %s478_s13  }
  0x32   : > { %155 = sbr.rel (%p152_p3) target bundleno = 85 (0x55), region = 28  ;;  %s307_s10 = sshll.u32 (!%p152_p3), %s634_s6, 4 }
  0x33   : > { %s158_s11 = scalar_lea.sflag (!%p152_p3), [#allocation5], %s634_s6  ;;  %s161_s17 = scalar_lea.vmem (!%p152_p3), [#allocation4], %s307_s10 }
  0x39   : > { %465 = dma.done.wait (%p569_p8), %s158_s11, 256  }
  0x3a   : > { %467 = vsyncadd (%p569_p8), %s158_s11, 4294967040  ;;  %s181_s5 = scalar_lea.vmem [#allocation7], %s307_s10  ;;  %s315_s8 = sshll.u32 %s486_s0, 8  ;;  %v186_v0 = vld [vmem:[%s705_s2] sm:$0xff]  ;;  %v187_v2 = vld [vmem:[%s705_s2 + $0x8] sm:$0xff] }
  0x3b   : > { %s210_s7 = sshll.u32 %s181_s5, 4  ;;  %v188_v1 = vld [vmem:[%s161_s17] sm:$0xff]  ;;  %v189_v4 = vld [vmem:[%s161_s17 + $0x8] sm:$0xff]  ;;  %s654_s0 = scalar_lea.hbm %s706_s3, %s315_s8  ;;  %s649_s7 = int_to_ptr.vmem [resolvable:$true] %s210_s7 }
  0x3c   : > { %v190_v3 = vadd.f32 %v188_v1, %v186_v0  ;;  %v191_v5 = vadd.f32 %v189_v4, %v187_v2  ;;  %s195_s27 = scalar_lea.sflag [#allocation6], %s634_s6  ;;  %s412_s28 = scalar_lea.vmem %s649_s7, 256 }
  0x3d   : > { %p413_p8 = scmp.ne.s32.totalorder %s649_s7, %s412_s28  ;;  %p714_p9 = scmp.ne.s32.totalorder %s710_s24, 0 }
  0x3e   : > { %192 = vst [vmem:[%s181_s5] sm:$0xff] %v190_v3  ;;  %193 = vst [vmem:[%s181_s5 + $0x8] sm:$0xff] %v191_v5  ;;  %s499_s29 = smov [#allocation7]  }
  0x3f   : > { %p414_p11 = pnand %p413_p8, %p714_p9  ;;  %s416_s30 = sshll.u32 %s499_s29, 4  ;;  %s417_s30 = int_to_ptr.vmem [resolvable:$false] %s416_s30 }
  0x40   : > { %s418_s4 = scalar_lea.vmem %s417_s30, 512  ;;  %p419_p6 = scmp.lt.s32.totalorder %s649_s7, %s417_s30 }
  0x41   : > { %p415_p0 = pneg %p414_p11  ;;  %p420_p13 = scmp.lt.s32.totalorder %s418_s4, %s412_s28 }
  0x43   : > { %p421_p2 = por %p420_p13, %p419_p6 }
  0x45   : > { %p422_p5 = pnand %p421_p2, %p415_p0 }
  0x47   : > { %425 = shalt.err (!%p422_p5)
}
  0x48   : > { %s426_s10 = scalar_lea.hbm %s654_s0, 256  ;;  %s430_s5 = scalar_lea.hbm %s706_s3, 512 }
  0x49   : > { %p427_p4 = scmp.ne.s32.totalorder %s654_s0, %s426_s10  ;;  %p431_p12 = scmp.lt.u32.totalorder %s654_s0, %s706_s3 }
  0x4a   : > { %p432_p1 = scmp.lt.u32.totalorder %s430_s5, %s426_s10  ;;  %p434_p8 = scmp.lt.u32.totalorder %s426_s10, %s654_s0 }
  0x4b   : > { %p428_p7 = pnand %p427_p4, %p714_p9 }
  0x4c   : > { %p433_p3 = por %p432_p1, %p431_p12 }
  0x4d   : > { %p429_p10 = pneg %p428_p7 }
  0x4e   : > { %p435_p11 = por %p434_p8, %p433_p3 }
  0x50   : > { %p436_p0 = pnand %p435_p11, %p429_p10 }
  0x52   : > { %439 = shalt.err (!%p436_p0)
}
  0x53   : > { %s500_s18 = smov 128   ;;  %s501_s20 = smov 8  }
  0x54   : > { %318 = dma.vmem_to_hbm [thread:$0]  (%p714_p9), %s649_s7, 256, %s654_s0, %s195_s27, %s500_s18, %s500_s18, %s501_s20  }
  0x55 PF: > { %s225_s21 = sand.u32 1, %s474_s12   ;;  %p715_p6 = scmp.ne.s32.totalorder %s711_s26, 0 }
  0x56   : > { %p716_p13 = scmp.ge.s32.totalorder %s494_s16, 2  ;;  %s226_s23 = scalar_lea.sflag [#allocation6], %s225_s21 }
  0x58   : > { %p325_p2 = pnand %p716_p13, %p715_p6 }
  0x5a   : > { %469 = dma.done.wait (!%p325_p2), %s226_s23, 256  }
  0x5b   : > { %471 = vsyncadd (!%p325_p2), %s226_s23, 4294967040  ;;  %s20_s16 = sadd.s32 1, %s494_s16   ;;  %s717_s12 = smov %s478_s13 }
  0x5c   : > { %p17_p5 = scmp.ge.s32.totalorder %s20_s16, 4   ;;  %s718_s13 = smov %s482_s14 }
  0x5d   : > { %s719_s14 = smov %s578_s25  ;;  %s720_s0 = smov %s490_s15 }
  0x5e   : > { %s721_s15 = smov %s723_s19  ;;  %19 = sbr.rel (!%p17_p5) target bundleno = 6 (0x6), region = 74 }
  0x65   :  { %231 = vsyncpa [#allocation5], 1 }
  0x66   :  { %233 = vsyncpa [#allocation5 + $0x1], 1 }
  0x67   :  { %234 = vsyncpa [#allocation6], 1 }
  0x68   :  { %236 = vsyncpa [#allocation6 + $0x1], 1 }

</bundles_post_ra>
